<compile_context>
chip_gen: v7x
topology: tpu7x:2x2x1
jax: 0.10.0
libtpu: 0.0.40
codegen_flags: <defaults>
</compile_context>

<pallas_src>
import functools

import jax
import jax.numpy as jnp
from jax.experimental import pallas as pl
from jax.experimental.pallas import tpu as pltpu

_NEG_BIG = -1.0e30          # finite stand-in for -inf (running K max init)
_MASK_PENALTY = 1.0e6       # matches the PyTorch module


def _softer_softmax_kernel(mask_ref, q_ref, k_ref, v_ref, o_ref,
                           acc_ref, ksum_ref, kmax_ref, *, compute_dtype):
    lk = pl.program_id(1)

    @pl.when(lk == 0)
    def _init():
        acc_ref[...] = jnp.zeros_like(acc_ref)
        ksum_ref[...] = jnp.zeros_like(ksum_ref)
        kmax_ref[...] = jnp.full(kmax_ref.shape, _NEG_BIG, dtype=kmax_ref.dtype)

    # ---- accumulate exp(K)^T @ V and sum_L exp(K) over this Lk tile -------
    k = k_ref[...].astype(jnp.float32)                 # [G, LK, D]
    m = mask_ref[...].astype(jnp.float32)              # [G, LK, 1]
    # Additive mask penalty, exactly as the PyTorch module.
    k_eff = k - _MASK_PENALTY * (1.0 - m)

    # Online max per head; it cancels exactly in attn/norm (pure stabilisation).
    tile_max = jnp.max(jnp.max(k_eff, axis=2, keepdims=True),
                       axis=1, keepdims=True)          # [G, 1, 1]
    run_max = kmax_ref[...]
    new_max = jnp.maximum(run_max, tile_max)
    alpha = jnp.exp(run_max - new_max)                 # rescale previous tiles
    kmax_ref[...] = new_max

    ke = jnp.exp(k_eff - new_max)                      # [G, LK, D], in (0, 1]
    ke_c = ke.astype(compute_dtype)
    v_c = v_ref[...].astype(compute_dtype)

    # Per-head Ke^T @ V as ONE batched dim-0-contracting matmul (no transpose,
    # no unrolled per-head loop).
    contrib = jnp.einsum("gld,gle->gde", ke_c, v_c,
                         preferred_element_type=jnp.float32)           # [G, D, D]
    acc_ref[...] = acc_ref[...] * alpha + contrib
    ksum_ref[...] = ksum_ref[...] * alpha + jnp.sum(ke, axis=1, keepdims=True)

    # ---- finalise: apply accumulated operator to Q and normalise ----------
    @pl.when(lk == pl.num_programs(1) - 1)
    def _finalize():
        q = q_ref[...].astype(jnp.float32)             # [G, L, D]
        qmax = jnp.max(q, axis=-1, keepdims=True)      # per-row max; cancels
        qe = jnp.exp(q - qmax)

        # norm = Qe @ sum_L(Ke) as a VPU multiply + lane reduce (no MXU).
        norm = jnp.sum(qe * ksum_ref[...], axis=-1, keepdims=True)     # [G, L, 1]
        inv = pl.reciprocal(norm, approx=True)
        inv = inv * (2.0 - norm * inv)                 # one Newton step

        qe_c = qe.astype(compute_dtype)
        acc_c = acc_ref[...].astype(compute_dtype)
        attn = jnp.einsum("gld,gde->gle", qe_c, acc_c,
                          preferred_element_type=jnp.float32)          # [G, L, D]
        o_ref[...] = (attn * inv).astype(o_ref.dtype)


def _pick_lk_tile(L, max_tile=1024):
    if L <= max_tile:
        return L
    for cand in range(max_tile, 127, -128):      # multiples of 128 dividing L
        if L % cand == 0:
            return cand
    return L                                     # fall back to full length


def _pick_heads_per_step(BH, L, LK, D, in_bytes, out_bytes, budget, cap=32):
    def est(g):
        qo = 2 * g * L * D * (in_bytes + out_bytes)    # Q + O, double-buffered
        kv = 2 * 2 * g * LK * D * in_bytes             # K + V, double-buffered
        msk = 2 * g * LK * 4
        scr = 4 * g * (D * D + D + 1)                  # f32 accumulators
        return qo + kv + msk + scr

    g = min(BH, cap)
    while BH % g:
        g -= 1
    while g > 1 and est(g) > budget:
        g -= 1
        while BH % g:
            g -= 1
    return g, est(g)


def softer_softmax_attention(Q, K, V, mask, *, compute_dtype=jnp.float32):
    """Q, K, V: [B, H, L, D]; mask: [B, L] (1 keep / 0 masked). Returns [B, H, L, D]."""
    B, H, L, D = Q.shape
    BH = B * H

    Qr = Q.reshape(BH, L, D)
    Kr = K.reshape(BH, L, D)
    Vr = V.reshape(BH, L, D)
    # Mask broadcast per head, laid out [BH, L, 1] so L sits on the sublane
    # axis (matching K) - no in-kernel relayout needed.
    Mr = jnp.broadcast_to(mask.astype(jnp.float32)[:, None, :],
                          (B, H, L)).reshape(BH, L)[..., None]

    # ---- VMEM-budget-aware tile sizing (v7x has 64 MiB physical VMEM) -----
    try:
        vmem_phys = int(getattr(pltpu.get_tpu_info(), "vmem_capacity_bytes",
                                64 * 1024 * 1024))
    except Exception:
        vmem_phys = 64 * 1024 * 1024
    budget = int(vmem_phys * 0.55)

    LK = _pick_lk_tile(L)
    in_bytes = Q.dtype.itemsize
    out_bytes = Q.dtype.itemsize
    G, est = _pick_heads_per_step(BH, L, LK, D, in_bytes, out_bytes, budget)
    vmem_limit = int(min(int(vmem_phys * 0.75),
                         max(48 * 1024 * 1024, int(est * 1.5))))

    grid = (BH // G, L // LK)

    q_spec = pl.BlockSpec((G, L, D), lambda g, j: (g, 0, 0))
    kv_spec = pl.BlockSpec((G, LK, D), lambda g, j: (g, j, 0))
    m_spec = pl.BlockSpec((G, LK, 1), lambda g, j: (g, j, 0))
    o_spec = pl.BlockSpec((G, L, D), lambda g, j: (g, 0, 0))

    kernel = functools.partial(_softer_softmax_kernel,
                               compute_dtype=compute_dtype)

    cost = pl.CostEstimate(
        flops=4 * BH * L * D * D,                  # the two matmuls
        transcendentals=2 * BH * L * D,            # exp(Q), exp(K)
        bytes_accessed=4 * BH * L * D * in_bytes + BH * L * 4)

    out = pl.pallas_call(
        kernel,
        out_shape=jax.ShapeDtypeStruct((BH, L, D), Q.dtype),
        grid_spec=pltpu.PrefetchScalarGridSpec(
            num_scalar_prefetch=0,
            grid=grid,
            in_specs=[m_spec, q_spec, kv_spec, kv_spec],
            out_specs=o_spec,
            scratch_shapes=[
                pltpu.VMEM((G, D, D), jnp.float32),   # attn_inter accumulator
                pltpu.VMEM((G, 1, D), jnp.float32),   # sum_L exp(K)
                pltpu.VMEM((G, 1, 1), jnp.float32),   # running K max
            ],
        ),
        compiler_params=pltpu.CompilerParams(
            dimension_semantics=("parallel", "arbitrary"),
            vmem_limit_bytes=vmem_limit,
        ),
        cost_estimate=cost,
    )(Mr, Qr, Kr, Vr)

    return out.reshape(B, H, L, D)


def _reference(Q, K, V, mask):
    # Pure-JAX reference mirroring the PyTorch forward.
    hi = jax.lax.Precision.HIGHEST
    Km = K - 1000000.0 * (1.0 - mask[:, None, :, None])
    Qe = jnp.exp(Q)
    Ke = jnp.exp(Km)
    attn_inter = jnp.einsum("bhld,bhle->bhde", Ke, V, precision=hi)
    attn_weights = jnp.einsum("bhld,bhde->bhle", Qe, attn_inter, precision=hi)
    norm = jnp.einsum("bhld,bhd->bhl", Qe, Ke.sum(axis=2), precision=hi)[..., None]
    return attn_weights / norm


if __name__ == "__main__":
    # Small, module-consistent shapes: batch=2, num_head=2, seq=8, head_dim=16.
    B, H, L, D = 2, 2, 8, 16
    key = jax.random.PRNGKey(0)
    kq, kk, kv = jax.random.split(key, 3)

    Q = jax.random.normal(kq, (B, H, L, D), dtype=jnp.float32) * 0.5
    K = jax.random.normal(kk, (B, H, L, D), dtype=jnp.float32) * 0.5
    V = jax.random.normal(kv, (B, H, L, D), dtype=jnp.float32)
    # Binary mask: last two positions of batch 1 masked out.
    mask = jnp.ones((B, L), dtype=jnp.float32).at[1, -2:].set(0.0)

    out = jax.block_until_ready(softer_softmax_attention(Q, K, V, mask))
    ref = _reference(Q, K, V, mask)
    assert out.shape == (B, H, L, D)
    assert bool(jnp.all(jnp.isfinite(out)))
    assert jnp.allclose(out, ref, rtol=1e-3, atol=1e-3), "f32 kernel mismatch"

    # Optional bf16-MXU-operand path (v6e/v7x); accumulation stays f32.
    out_bf16 = jax.block_until_ready(
        softer_softmax_attention(Q, K, V, mask, compute_dtype=jnp.bfloat16))
    assert jnp.allclose(out_bf16, ref, rtol=5e-2, atol=5e-2), "bf16 kernel mismatch"

    print("KERNEL_OK")
</pallas_src>

<mosaic_0001>
module attributes {stable_mosaic.version = 11 : i64} {
  func.func @_softer_softmax_kernel(%arg0: i32, %arg1: i32, %arg2: memref<4x8x1xf32, #tpu.memory_space<vmem>>, %arg3: memref<4x8x16xf32, #tpu.memory_space<vmem>>, %arg4: memref<4x8x16xf32, #tpu.memory_space<vmem>>, %arg5: memref<4x8x16xf32, #tpu.memory_space<vmem>>, %arg6: memref<4x8x16xf32, #tpu.memory_space<vmem>>, %arg7: memref<4x16x16xf32, #tpu.memory_space<vmem>>, %arg8: memref<4x1x16xf32, #tpu.memory_space<vmem>>, %arg9: memref<4x1x1xf32, #tpu.memory_space<vmem>>) attributes {dimension_semantics = [#tpu.dimension_semantics<parallel>, #tpu.dimension_semantics<arbitrary>], iteration_bounds = array<i64: 1, 1>, scalar_prefetch = 0 : i64, scratch_operands = 3 : i64, tpu.core_type = #tpu.core_type<tc>, window_params = [{transform_indices = @transform_0, window_bounds = array<i64: 4, 8, 1>}, {transform_indices = @transform_1, window_bounds = array<i64: 4, 8, 16>}, {transform_indices = @transform_2, window_bounds = array<i64: 4, 8, 16>}, {transform_indices = @transform_3, window_bounds = array<i64: 4, 8, 16>}, {transform_indices = @transform_4, window_bounds = array<i64: 4, 8, 16>}]} {
    %c0_i32 = arith.constant 0 : i32
    %0 = arith.cmpi eq, %arg1, %c0_i32 : i32
    %1 = arith.extui %0 : i1 to i32
    %c0_i32_0 = arith.constant 0 : i32
    %2 = arith.cmpi ne, %1, %c0_i32_0 : i32
    scf.if %2 {
      %cst_34 = arith.constant 0.000000e+00 : f32
      %40 = vector.broadcast %cst_34 : f32 to vector<4x16x16xf32>
      %c0_35 = arith.constant 0 : index
      %c0_36 = arith.constant 0 : index
      %c0_37 = arith.constant 0 : index
      %41 = vector.load %arg7[%c0_35, %c0_36, %c0_37] : memref<4x16x16xf32, #tpu.memory_space<vmem>>, vector<4x16x16xf32>
      tpu.vector_store %arg7[%c0_35, %c0_36, %c0_37], %40 {strides = array<i32>} : memref<4x16x16xf32, #tpu.memory_space<vmem>>, vector<4x16x16xf32>,
      %cst_38 = arith.constant 0.000000e+00 : f32
      %42 = vector.broadcast %cst_38 : f32 to vector<4x1x16xf32>
      %c0_39 = arith.constant 0 : index
      %c0_40 = arith.constant 0 : index
      %c0_41 = arith.constant 0 : index
      %43 = vector.load %arg8[%c0_39, %c0_40, %c0_41] : memref<4x1x16xf32, #tpu.memory_space<vmem>>, vector<4x1x16xf32>
      tpu.vector_store %arg8[%c0_39, %c0_40, %c0_41], %42 {strides = array<i32>} : memref<4x1x16xf32, #tpu.memory_space<vmem>>, vector<4x1x16xf32>,
      %cst_42 = arith.constant -1.000000e+30 : f32
      %44 = vector.broadcast %cst_42 : f32 to vector<4x1x1xf32>
      %c0_43 = arith.constant 0 : index
      %c0_44 = arith.constant 0 : index
      %c0_45 = arith.constant 0 : index
      %45 = vector.load %arg9[%c0_43, %c0_44, %c0_45] : memref<4x1x1xf32, #tpu.memory_space<vmem>>, vector<4x1x1xf32>
      tpu.vector_store %arg9[%c0_43, %c0_44, %c0_45], %44 {strides = array<i32>} : memref<4x1x1xf32, #tpu.memory_space<vmem>>, vector<4x1x1xf32>,
    } else {
    }
    %c0 = arith.constant 0 : index
    %c0_1 = arith.constant 0 : index
    %c0_2 = arith.constant 0 : index
    %3 = vector.load %arg4[%c0, %c0_1, %c0_2] : memref<4x8x16xf32, #tpu.memory_space<vmem>>, vector<4x8x16xf32>
    %c0_3 = arith.constant 0 : index
    %c0_4 = arith.constant 0 : index
    %c0_5 = arith.constant 0 : index
    %4 = vector.load %arg2[%c0_3, %c0_4, %c0_5] : memref<4x8x1xf32, #tpu.memory_space<vmem>>, vector<4x8x1xf32>
    %cst = arith.constant 1.000000e+00 : f32
    %5 = vector.broadcast %cst : f32 to vector<4x8x1xf32>
    %6 = arith.subf %5, %4 : vector<4x8x1xf32>
    %cst_6 = arith.constant 1.000000e+06 : f32
    %7 = vector.broadcast %cst_6 : f32 to vector<4x8x1xf32>
    %8 = arith.mulf %7, %6 : vector<4x8x1xf32>
    %9 = vector.broadcast %8 : vector<4x8x1xf32> to vector<4x8x16xf32>
    %10 = arith.subf %3, %9 : vector<4x8x16xf32>
    %cst_7 = arith.constant dense<0xFF800000> : vector<4x8xf32>
    %11 = vector.multi_reduction <maximumf>, %10, %cst_7 [2] : vector<4x8x16xf32> to vector<4x8xf32>
    %12 = vector.shape_cast %11 : vector<4x8xf32> to vector<4x8x1xf32>
    %cst_8 = arith.constant dense<0xFF800000> : vector<4x1xf32>
    %13 = vector.multi_reduction <maximumf>, %12, %cst_8 [1] : vector<4x8x1xf32> to vector<4x1xf32>
    %14 = vector.shape_cast %13 : vector<4x1xf32> to vector<4x1x1xf32>
    %c0_9 = arith.constant 0 : index
    %c0_10 = arith.constant 0 : index
    %c0_11 = arith.constant 0 : index
    %15 = vector.load %arg9[%c0_9, %c0_10, %c0_11] : memref<4x1x1xf32, #tpu.memory_space<vmem>>, vector<4x1x1xf32>
    %16 = arith.maximumf %15, %14 : vector<4x1x1xf32>
    %17 = arith.subf %15, %16 : vector<4x1x1xf32>
    %18 = math.exp %17 : vector<4x1x1xf32>
    %c0_12 = arith.constant 0 : index
    %c0_13 = arith.constant 0 : index
    %c0_14 = arith.constant 0 : index
    %19 = vector.load %arg9[%c0_12, %c0_13, %c0_14] : memref<4x1x1xf32, #tpu.memory_space<vmem>>, vector<4x1x1xf32>
    tpu.vector_store %arg9[%c0_12, %c0_13, %c0_14], %16 {strides = array<i32>} : memref<4x1x1xf32, #tpu.memory_space<vmem>>, vector<4x1x1xf32>,
    %20 = vector.broadcast %16 : vector<4x1x1xf32> to vector<4x8x16xf32>
    %21 = arith.subf %10, %20 : vector<4x8x16xf32>
    %22 = math.exp %21 : vector<4x8x16xf32>
    %c0_15 = arith.constant 0 : index
    %c0_16 = arith.constant 0 : index
    %c0_17 = arith.constant 0 : index
    %23 = vector.load %arg5[%c0_15, %c0_16, %c0_17] : memref<4x8x16xf32, #tpu.memory_space<vmem>>, vector<4x8x16xf32>
    "tpu.trace_start"() <{level = 10 : i32, message = "gld,gle->gde"}> : () -> ()
    %cst_18 = arith.constant dense<0.000000e+00> : vector<4x16x16xf32>
    %24 = tpu.matmul %22, %23, %cst_18 {dimension_numbers = #tpu.dot_dimension_numbers<[1], [1], [2], [2], [0, 0, 0, 2, 1, 2], [0], [0]>} : vector<4x8x16xf32>, vector<4x8x16xf32>, vector<4x16x16xf32> -> vector<4x16x16xf32>
    "tpu.trace_stop"() : () -> ()
    %c0_19 = arith.constant 0 : index
    %c0_20 = arith.constant 0 : index
    %c0_21 = arith.constant 0 : index
    %25 = vector.load %arg7[%c0_19, %c0_20, %c0_21] : memref<4x16x16xf32, #tpu.memory_space<vmem>>, vector<4x16x16xf32>
    %26 = vector.broadcast %18 : vector<4x1x1xf32> to vector<4x16x16xf32>
    %27 = arith.mulf %25, %26 : vector<4x16x16xf32>
    %28 = arith.addf %27, %24 : vector<4x16x16xf32>
    %c0_22 = arith.constant 0 : index
    %c0_23 = arith.constant 0 : index
    %c0_24 = arith.constant 0 : index
    %29 = vector.load %arg7[%c0_22, %c0_23, %c0_24] : memref<4x16x16xf32, #tpu.memory_space<vmem>>, vector<4x16x16xf32>
    tpu.vector_store %arg7[%c0_22, %c0_23, %c0_24], %28 {strides = array<i32>} : memref<4x16x16xf32, #tpu.memory_space<vmem>>, vector<4x16x16xf32>,
    %c0_25 = arith.constant 0 : index
    %c0_26 = arith.constant 0 : index
    %c0_27 = arith.constant 0 : index
    %30 = vector.load %arg8[%c0_25, %c0_26, %c0_27] : memref<4x1x16xf32, #tpu.memory_space<vmem>>, vector<4x1x16xf32>
    %31 = vector.broadcast %18 : vector<4x1x1xf32> to vector<4x1x16xf32>
    %32 = arith.mulf %30, %31 : vector<4x1x16xf32>
    %cst_28 = arith.constant dense<0.000000e+00> : vector<4x16xf32>
    %33 = vector.multi_reduction <add>, %22, %cst_28 [1] : vector<4x8x16xf32> to vector<4x16xf32>
    %34 = vector.shape_cast %33 : vector<4x16xf32> to vector<4x1x16xf32>
    %35 = arith.addf %32, %34 : vector<4x1x16xf32>
    %c0_29 = arith.constant 0 : index
    %c0_30 = arith.constant 0 : index
    %c0_31 = arith.constant 0 : index
    %36 = vector.load %arg8[%c0_29, %c0_30, %c0_31] : memref<4x1x16xf32, #tpu.memory_space<vmem>>, vector<4x1x16xf32>
    tpu.vector_store %arg8[%c0_29, %c0_30, %c0_31], %35 {strides = array<i32>} : memref<4x1x16xf32, #tpu.memory_space<vmem>>, vector<4x1x16xf32>,
    %c0_i32_32 = arith.constant 0 : i32
    %37 = arith.cmpi eq, %arg1, %c0_i32_32 : i32
    %38 = arith.extui %37 : i1 to i32
    %c0_i32_33 = arith.constant 0 : i32
    %39 = arith.cmpi ne, %38, %c0_i32_33 : i32
    scf.if %39 {
      %c0_34 = arith.constant 0 : index
      %c0_35 = arith.constant 0 : index
      %c0_36 = arith.constant 0 : index
      %40 = vector.load %arg3[%c0_34, %c0_35, %c0_36] : memref<4x8x16xf32, #tpu.memory_space<vmem>>, vector<4x8x16xf32>
      %cst_37 = arith.constant dense<0xFF800000> : vector<4x8xf32>
      %41 = vector.multi_reduction <maximumf>, %40, %cst_37 [2] : vector<4x8x16xf32> to vector<4x8xf32>
      %42 = vector.shape_cast %41 : vector<4x8xf32> to vector<4x8x1xf32>
      %43 = vector.broadcast %42 : vector<4x8x1xf32> to vector<4x8x16xf32>
      %44 = arith.subf %40, %43 : vector<4x8x16xf32>
      %45 = math.exp %44 : vector<4x8x16xf32>
      %c0_38 = arith.constant 0 : index
      %c0_39 = arith.constant 0 : index
      %c0_40 = arith.constant 0 : index
      %46 = vector.load %arg8[%c0_38, %c0_39, %c0_40] : memref<4x1x16xf32, #tpu.memory_space<vmem>>, vector<4x1x16xf32>
      %47 = vector.broadcast %46 : vector<4x1x16xf32> to vector<4x8x16xf32>
      %48 = arith.mulf %45, %47 : vector<4x8x16xf32>
      %cst_41 = arith.constant dense<0.000000e+00> : vector<4x8xf32>
      %49 = vector.multi_reduction <add>, %48, %cst_41 [2] : vector<4x8x16xf32> to vector<4x8xf32>
      %50 = vector.shape_cast %49 : vector<4x8xf32> to vector<4x8x1xf32>
      %51 = tpu.reciprocal %50 {approx = true} : vector<4x8x1xf32> -> vector<4x8x1xf32>
      %52 = arith.mulf %50, %51 : vector<4x8x1xf32>
      %cst_42 = arith.constant 2.000000e+00 : f32
      %53 = vector.broadcast %cst_42 : f32 to vector<4x8x1xf32>
      %54 = arith.subf %53, %52 : vector<4x8x1xf32>
      %55 = arith.mulf %51, %54 : vector<4x8x1xf32>
      %c0_43 = arith.constant 0 : index
      %c0_44 = arith.constant 0 : index
      %c0_45 = arith.constant 0 : index
      %56 = vector.load %arg7[%c0_43, %c0_44, %c0_45] : memref<4x16x16xf32, #tpu.memory_space<vmem>>, vector<4x16x16xf32>
      "tpu.trace_start"() <{level = 10 : i32, message = "gld,gde->gle"}> : () -> ()
      %cst_46 = arith.constant dense<0.000000e+00> : vector<4x8x16xf32>
      %57 = tpu.matmul %45, %56, %cst_46 {dimension_numbers = #tpu.dot_dimension_numbers<[2], [1], [1], [2], [0, 0, 0, 1, 1, 2], [0], [0]>} : vector<4x8x16xf32>, vector<4x16x16xf32>, vector<4x8x16xf32> -> vector<4x8x16xf32>
      "tpu.trace_stop"() : () -> ()
      %58 = vector.broadcast %55 : vector<4x8x1xf32> to vector<4x8x16xf32>
      %59 = arith.mulf %57, %58 : vector<4x8x16xf32>
      %c0_47 = arith.constant 0 : index
      %c0_48 = arith.constant 0 : index
      %c0_49 = arith.constant 0 : index
      %60 = vector.load %arg6[%c0_47, %c0_48, %c0_49] : memref<4x8x16xf32, #tpu.memory_space<vmem>>, vector<4x8x16xf32>
      tpu.vector_store %arg6[%c0_47, %c0_48, %c0_49], %59 {strides = array<i32>} : memref<4x8x16xf32, #tpu.memory_space<vmem>>, vector<4x8x16xf32>,
    } else {
    }
    return
  }
  func.func @transform_0(%arg0: i32, %arg1: i32) -> (i32, i32, i32) {
    %c0_i32 = arith.constant 0 : i32
    %c0_i32_0 = arith.constant 0 : i32
    return %arg0, %arg1, %c0_i32 : i32, i32, i32
  }
  func.func @transform_1(%arg0: i32, %arg1: i32) -> (i32, i32, i32) {
    %c0_i32 = arith.constant 0 : i32
    %c0_i32_0 = arith.constant 0 : i32
    %c0_i32_1 = arith.constant 0 : i32
    return %arg0, %c0_i32, %c0_i32_0 : i32, i32, i32
  }
  func.func @transform_2(%arg0: i32, %arg1: i32) -> (i32, i32, i32) {
    %c0_i32 = arith.constant 0 : i32
    %c0_i32_0 = arith.constant 0 : i32
    return %arg0, %arg1, %c0_i32 : i32, i32, i32
  }
  func.func @transform_3(%arg0: i32, %arg1: i32) -> (i32, i32, i32) {
    %c0_i32 = arith.constant 0 : i32
    %c0_i32_0 = arith.constant 0 : i32
    return %arg0, %arg1, %c0_i32 : i32, i32, i32
  }
  func.func @transform_4(%arg0: i32, %arg1: i32) -> (i32, i32, i32) {
    %c0_i32 = arith.constant 0 : i32
    %c0_i32_0 = arith.constant 0 : i32
    %c0_i32_1 = arith.constant 0 : i32
    return %arg0, %c0_i32, %c0_i32_0 : i32, i32, i32
  }
}

</mosaic_0001>

<bundles_post_ra>
// kernel: tpu_custom_call.1
= control target key start
LH: loop header
LB: loop body
LE: loop exit
PB: predicated region body
PF: predicated region fallthrough
CT: control target
= control target key end

     0   :  { %9 = vsyncpa [#allocation6], 0  ;;  %s1773_s0 = inlined_call_operand.vmem [shape: f32[4,8,1], index: 0, kind: input, shape index: {}]   ;;  %s1774_s1 = inlined_call_operand.vmem [shape: f32[4,8,16], index: 1, kind: input, shape index: {}]   ;;  %s1775_s2 = inlined_call_operand.hbm [shape: f32[4,8,16], index: 2, kind: input, shape index: {}]   ;;  %s1776_s3 = inlined_call_operand.hbm [shape: f32[4,8,16], index: 3, kind: input, shape index: {}]   ;;  %s1777_s4 = inlined_call_operand.hbm [shape: f32[4,8,16], index: 4, kind: output, shape index: {}]  }
   0x1   :  { %10 = vsyncpa [#allocation9], 0 }
   0x2   :  { %11 = vsyncpa [#allocation7], 0  ;;  %s1454_s15 = smov [#allocation5]   ;;  %s1382_s19 = scalar_lea.hbm %s1775_s2, 512 }
   0x3   :  { %s21_s16 = sshll.u32 %s1454_s15, 4  ;;  %p1383_p0 = scmp.ne.s32.totalorder %s1775_s2, %s1382_s19  ;;  %s22_s16 = int_to_ptr.vmem [resolvable:$true] %s21_s16 }
   0x4   :  { %p1386_p1 = scmp.lt.u32.totalorder %s1382_s19, %s1775_s2 }
   0x6   :  { %p1388_p2 = pnand %p1386_p1, %p1383_p0 }
   0x8   :  { %1391 = shalt.err (!%p1388_p2)
}
   0x9   :  { %s1392_s24 = scalar_lea.vmem %s22_s16, 512  ;;  %p1397_p4 = scmp.lt.s32.totalorder %s22_s16, %s22_s16 }
   0xa   :  { %p1393_p3 = scmp.ne.s32.totalorder %s22_s16, %s1392_s24  ;;  %p1398_p5 = scmp.lt.s32.totalorder %s1392_s24, %s1392_s24 }
   0xc   :  { %p1399_p6 = por %p1398_p5, %p1397_p4 }
   0xe   :  { %p1400_p7 = pnand %p1399_p6, %p1393_p3 }
  0x10   :  { %1403 = shalt.err (!%p1400_p7)
}
  0x11   :  { %s1455_s25 = smov 128   ;;  %s1456_s26 = smov 8  }
  0x12   :  { %27 = dma.hbm_to_vmem [thread:$0]  %s1775_s2, 512, %s22_s16, [#allocation6], %s1455_s25, %s1455_s25, %s1456_s26  }
  0x13   :  { %s1457_s29 = smov [#allocation8]   ;;  %s1404_s7 = scalar_lea.hbm %s1776_s3, 512 }
  0x14   :  { %s33_s30 = sshll.u32 %s1457_s29, 4  ;;  %p1405_p8 = scmp.ne.s32.totalorder %s1776_s3, %s1404_s7  ;;  %s34_s30 = int_to_ptr.vmem [resolvable:$true] %s33_s30 }
  0x15   :  { %p1408_p9 = scmp.lt.u32.totalorder %s1404_s7, %s1776_s3 }
  0x17   :  { %p1410_p10 = pnand %p1408_p9, %p1405_p8 }
  0x19   :  { %1413 = shalt.err (!%p1410_p10)
}
  0x1a   :  { %s1414_s12 = scalar_lea.vmem %s34_s30, 512  ;;  %p1419_p12 = scmp.lt.s32.totalorder %s34_s30, %s34_s30 }
  0x1b   :  { %p1415_p11 = scmp.ne.s32.totalorder %s34_s30, %s1414_s12  ;;  %p1420_p13 = scmp.lt.s32.totalorder %s1414_s12, %s1414_s12 }
  0x1d   :  { %p1421_p0 = por %p1420_p13, %p1419_p12 }
  0x1f   :  { %p1422_p1 = pnand %p1421_p0, %p1415_p11 }
  0x21   :  { %1425 = shalt.err (!%p1422_p1)
}
  0x22   :  { %39 = dma.hbm_to_vmem [thread:$0]  %s1776_s3, 512, %s34_s30, [#allocation9], %s1455_s25, %s1455_s25, %s1456_s26  }
  0x23   :  { %1448 = dma.done.wait [#allocation6], 512  }
  0x24   :  { %1449 = vsyncadd [#allocation6], 4294966784 }
  0x25   :  { %1450 = dma.done.wait [#allocation9], 512  }
  0x26   :  { %1451 = vsyncadd [#allocation9], 4294966784  ;;  %v1458_v0 = vmov 0   ;;  %v73_v1 = vld [vmem:[%s1773_s0] sm:$0xff]  ;;  %v75_v2 = vld [vmem:[%s1773_s0 + $0x10] sm:$0xff]  ;;  %vm64_vm0 = vcmask 0   ;;  %v175_v35 = vlaneseq }
  0x27   :  { %1348 = vset.pattern.permute.xlu0 %v1458_v0  ;;  %1349 = vset.pattern.permute.xlu1 %v1458_v0  ;;  %v74_v3 = vld [vmem:[%s1773_s0 + $0x8] sm:$0xff]  ;;  %v77_v4 = vsub.f32 1.0, %v73_v1  ;;  %v79_v5 = vsub.f32 1.0, %v75_v2  ;;  %v76_v7 = vld [vmem:[%s1773_s0 + $0x18] sm:$0xff]  ;;  %v1459_v13 = vmov -1e+30  }
  0x28   :  { %v78_v6 = vsub.f32 1.0, %v74_v3  ;;  %v80_v8 = vsub.f32 1.0, %v76_v7  ;;  %65 = vst.msk [vmem:[#allocation4] sm:$0x1] %vm64_vm0, %v1459_v13  ;;  %66 = vst.msk [vmem:[#allocation4 + $0x1] sm:$0x1] %vm64_vm0, %v1459_v13 }
  0x29   :  { %v81_v9 = vmul.f32 1000000.0, %v77_v4  ;;  %v83_v10 = vmul.f32 1000000.0, %v79_v5  ;;  %67 = vst.msk [vmem:[#allocation4 + $0x2] sm:$0x1] %vm64_vm0, %v1459_v13 }
  0x2a   :  { %v82_v11 = vmul.f32 1000000.0, %v78_v6  ;;  %v84_v12 = vmul.f32 1000000.0, %v80_v8  ;;  %68 = vst.msk [vmem:[#allocation4 + $0x3] sm:$0x1] %vm64_vm0, %v1459_v13 }
  0x2b   :  { %87 = vperm.xlu0 %1348, %v81_v9   ;;  %97 = vperm.xlu1 %1349, %v83_v10   ;;  %v69_v14 = vld [vmem:[#allocation5] sm:$0xff]  ;;  %v71_v15 = vld [vmem:[#allocation5 + $0x10] sm:$0xff]  ;;  %vm50_vm1 = vcmask 130048   ;;  %v70_v20 = vld [vmem:[#allocation5 + $0x8] sm:$0xff]  ;;  %v176_v43 = vshrl.u32 %v175_v35, 7  ;;  %vm59_vm2 = vcmask 122880  }
  0x2c   :  { %v72_v21 = vld [vmem:[#allocation5 + $0x18] sm:$0xff]  ;;  %v1616_v35 = vld [vmem:[%s1774_s1 + $0x10] sm:$0xff]  ;;  %vm255_vm3 = vcmask 64512   ;;  %vm1462_vm4 = vmmov 0  }
  0x2d   :  { %v1553_v53 = vsub.s32 0, %v176_v43 }
  0x2f   :  { %92 = vperm.xlu0 %1348, %v82_v11   ;;  %102 = vperm.xlu1 %1349, %v84_v12   ;;  %v1551_v48 = vld [vmem:[#allocation4] sm:$0x1]  ;;  %v1558_v58 = vld [vmem:[#allocation4 + $0x1] sm:$0x1] }
  0x30   :  { %v1560_v59 = vld [vmem:[#allocation4 + $0x2] sm:$0x1] }
  0x31   :  { %v1572_v4 = vld [vmem:[#allocation4 + $0x3] sm:$0x1] }
  0xaa   :  { %v88_v16 = vpop.permute.xlu0 %87  ;;  %v98_v17 = vpop.permute.xlu1 %97 }
  0xab   :  { %v1535_v18 = vsub.f32 %v69_v14, %v88_v16  ;;  %v1537_v19 = vsub.f32 %v71_v15, %v98_v17 }
  0xad   :  { %v110_v22 = vsel %vm50_vm1, %v1535_v18, -inf  ;;  %v116_v27 = vsel %vm50_vm1, %v1537_v19, -inf }
  0xae   :  { %v93_v23 = vpop.permute.xlu0 %92  ;;  %111 = vmax.xlane.f32.xlu0 %v110_v22  ;;  %v103_v24 = vpop.permute.xlu1 %102 }
  0xaf   :  { %v1541_v25 = vsub.f32 %v70_v20, %v93_v23  ;;  %v1543_v26 = vsub.f32 %v72_v21, %v103_v24 }
  0xb1   :  { %v113_v28 = vsel %vm50_vm1, %v1541_v25, -inf  ;;  %v119_v29 = vsel %vm50_vm1, %v1543_v26, -inf }
  0xb2   :  { %114 = vmax.xlane.f32.xlu1 %v113_v28  ;;  %117 = vmax.xlane.f32.xlu0 %v116_v27 }
  0xb6   :  { %120 = vmax.xlane.f32.xlu0 %v119_v29 }
 0x13b   :  { %v112_v30 = vpop.xlane.xlu0 %111 }
 0x13c   :  { %v122_v31 = vrot.slane %v112_v30, 4 }
 0x13e   :  { %v123_v32 = vmax.f32 %v112_v30, %v122_v31  ;;  %v221_v31 = vld [vmem:[#allocation8 + $0x10] sm:$0xff] }
 0x13f   :  { %v115_v33 = vpop.xlane.xlu1 %114  ;;  %v118_v34 = vpop.xlane.xlu0 %117 }
 0x140   :  { %v124_v36 = vrot.slane %v123_v32, 2  ;;  %v128_v37 = vrot.slane %v115_v33, 4  ;;  %v134_v38 = vrot.slane %v118_v34, 4 }
 0x142   :  { %v125_v39 = vmax.f32 %v123_v32, %v124_v36  ;;  %v129_v40 = vmax.f32 %v115_v33, %v128_v37  ;;  %v135_v41 = vmax.f32 %v118_v34, %v134_v38  ;;  %v1603_v32 = vld [vmem:[#allocation8 + $0x18] sm:$0xff]  ;;  %v1609_v33 = vld [vmem:[%s1774_s1 + $0x8] sm:$0xff]  ;;  %v834_v36 = vsel %vm50_vm1, %v1616_v35, -inf  ;;  %v1623_v37 = vld [vmem:[%s1774_s1 + $0x18] sm:$0xff] }
 0x143   :  { %v121_v42 = vpop.xlane.xlu0 %120  ;;  %v831_v34 = vsel %vm50_vm1, %v1609_v33, -inf  ;;  %v837_v38 = vsel %vm50_vm1, %v1623_v37, -inf }
 0x144   :  { %v126_v44 = vrot.slane %v125_v39, 1  ;;  %v130_v45 = vrot.slane %v129_v40, 2  ;;  %v136_v46 = vrot.slane %v135_v41, 2  ;;  %v140_v47 = vrot.slane %v121_v42, 4 }
 0x146   :  { %v127_v49 = vmax.f32 %v125_v39, %v126_v44  ;;  %v131_v50 = vmax.f32 %v129_v40, %v130_v45  ;;  %v137_v51 = vmax.f32 %v135_v41, %v136_v46  ;;  %v141_v52 = vmax.f32 %v121_v42, %v140_v47  ;;  %v1630_v40 = vld [vmem:[%s1774_s1] sm:$0xff]  ;;  %s1463_s1 = smov [#allocation10]  }
 0x147   :  { %v828_v41 = vsel %vm50_vm1, %v1630_v40, -inf  ;;  %v1460_v45 = vmov 0.0   ;;  %s1225_s30 = sshll.u32 %s1463_s1, 4  ;;  %s1226_s30 = int_to_ptr.vmem [resolvable:$true] %s1225_s30 }
 0x148   :  { %v1556_v54 = vmax.f32 %v1551_v48, %v127_v49  ;;  %v132_v55 = vrot.slane %v131_v50, 1  ;;  %v138_v56 = vrot.slane %v137_v51, 1  ;;  %v142_v57 = vrot.slane %v141_v52, 2  ;;  %53 = vst.msk [vmem:[#allocation2 + $0x10] sm:$0xff] %vm50_vm1, %v1460_v45  ;;  %54 = vst.msk [vmem:[#allocation2 + $0x18] sm:$0xff] %vm50_vm1, %v1460_v45  ;;  %s1426_s5 = scalar_lea.vmem %s1226_s30, 512  ;;  %p1431_p3 = scmp.lt.s32.totalorder %s1226_s30, %s1226_s30 }
 0x149   :  { %51 = vst.msk [vmem:[#allocation2] sm:$0xff] %vm50_vm1, %v1460_v45  ;;  %52 = vst.msk [vmem:[#allocation2 + $0x8] sm:$0xff] %vm50_vm1, %v1460_v45  ;;  %p1427_p2 = scmp.ne.s32.totalorder %s1226_s30, %s1426_s5  ;;  %p1432_p4 = scmp.lt.s32.totalorder %s1426_s5, %s1426_s5 }
 0x14a   :  { %v154_v60 = vsub.f32 %v1551_v48, %v1556_v54  ;;  %167 = vst.msk [vmem:[#allocation4] sm:$0x1] %vm64_vm0, %v1556_v54  ;;  %v133_v61 = vmax.f32 %v131_v50, %v132_v55  ;;  %v139_v62 = vmax.f32 %v137_v51, %v138_v56  ;;  %v143_v63 = vmax.f32 %v141_v52, %v142_v57 }
 0x14b   :  { %v178_v0 = vrot.slane %v1556_v54, %v1553_v53  ;;  %55 = vst.msk [vmem:[#allocation2 + $0x20] sm:$0xff] %vm50_vm1, %v1460_v45  ;;  %56 = vst.msk [vmem:[#allocation2 + $0x28] sm:$0xff] %vm50_vm1, %v1460_v45  ;;  %p1433_p5 = por %p1432_p4, %p1431_p3 }
 0x14c   :  { %v151_v1 = vmax.f32 %v1558_v58, %v133_v61  ;;  %v1570_v2 = vmax.f32 %v1560_v59, %v139_v62  ;;  %v144_v3 = vrot.slane %v143_v63, 1  ;;  %v158_v43 = vmul.f32 1.442695, %v154_v60  ;;  %57 = vst.msk [vmem:[#allocation2 + $0x30] sm:$0xff] %vm50_vm1, %v1460_v45  ;;  %58 = vst.msk [vmem:[#allocation2 + $0x38] sm:$0xff] %vm50_vm1, %v1460_v45 }
 0x14d   :  { %192 = vperm.xlu1 %1349, %v178_v0   ;;  %60 = vst.msk [vmem:[#allocation3] sm:$0x1] %vm59_vm2, %v1460_v45  ;;  %61 = vst.msk [vmem:[#allocation3 + $0x1] sm:$0x1] %vm59_vm2, %v1460_v45  ;;  %p1434_p6 = pnand %p1433_p5, %p1427_p2 }
 0x14e   :  { %v155_v5 = vsub.f32 %v1558_v58, %v151_v1  ;;  %168 = vst.msk [vmem:[#allocation4 + $0x1] sm:$0x1] %vm64_vm0, %v151_v1  ;;  %v156_v6 = vsub.f32 %v1560_v59, %v1570_v2  ;;  %169 = vst.msk [vmem:[#allocation4 + $0x2] sm:$0x1] %vm64_vm0, %v1570_v2  ;;  %v145_v7 = vmax.f32 %v143_v63, %v144_v3 }
 0x14f   :  { %v182_v8 = vrot.slane %v151_v1, %v1553_v53  ;;  %v186_v9 = vrot.slane %v1570_v2, %v1553_v53  ;;  %62 = vst.msk [vmem:[#allocation3 + $0x2] sm:$0x1] %vm59_vm2, %v1460_v45  ;;  %63 = vst.msk [vmem:[#allocation3 + $0x3] sm:$0x1] %vm59_vm2, %v1460_v45 }
 0x150   :  { %v153_v10 = vmax.f32 %v1572_v4, %v145_v7  ;;  %v160_v39 = vmul.f32 1.442695, %v155_v5  ;;  %v162_v42 = vmul.f32 1.442695, %v156_v6 }
 0x151   :  { %196 = vperm.xlu0 %1348, %v182_v8   ;;  %200 = vperm.xlu1 %1349, %v186_v9  }
 0x152   :  { %v157_v11 = vsub.f32 %v1572_v4, %v153_v10  ;;  %170 = vst.msk [vmem:[#allocation4 + $0x3] sm:$0x1] %vm64_vm0, %v153_v10  ;;  %v190_v12 = vrot.slane %v153_v10, %v1553_v53 }
 0x154   :  { %v164_v44 = vmul.f32 1.442695, %v157_v11 }
 0x155   :  { %204 = vperm.xlu1 %1349, %v190_v12  }
 0x1cc   :  { %v193_v13 = vpop.permute.xlu1 %192 }
 0x1cd   :  { %v207_v14 = vsub.f32 %v1535_v18, %v193_v13  ;;  %v219_v18 = vld [vmem:[#allocation8] sm:$0xff] }
 0x1ce   :  { %1278 = vmatprep.subr.mxu0 %v219_v18 }
 0x1cf   :  { %v211_v15 = vmul.f32 1.442695, %v207_v14  ;;  %1279 = vmatpush3.msra.mxu0 %v219_v18  ;;  %v744_v18 = vld [vmem:[#allocation3] sm:$0x1] }
 0x1d0   :  { %v197_v16 = vpop.permute.xlu0 %196  ;;  %v201_v17 = vpop.permute.xlu1 %200  ;;  %1288 = vmatprep.subr.mxu0 %v221_v31 }
 0x1d1   :  { %1350 = vpow2.f32 %v211_v15  ;;  %v208_v20 = vsub.f32 %v1541_v25, %v197_v16  ;;  %v209_v21 = vsub.f32 %v1537_v19, %v201_v17  ;;  %v220_v19 = vld [vmem:[#allocation8 + $0x8] sm:$0xff] }
 0x1d2   :  { %1283 = vmatprep.subr.mxu1 %v220_v19 }
 0x1d3   :  { %v213_v22 = vmul.f32 1.442695, %v208_v20  ;;  %v215_v23 = vmul.f32 1.442695, %v209_v21  ;;  %1284 = vmatpush3.msra.mxu1 %v220_v19 }
 0x1d4   :  { %v205_v24 = vpop.permute.xlu1 %204  ;;  %1293 = vmatprep.subr.mxu1 %v1603_v32 }
 0x1d5   :  { %1352 = vpow2.f32 %v213_v22  ;;  %v210_v27 = vsub.f32 %v1543_v26, %v205_v24 }
 0x1d6   :  { %1354 = vpow2.f32 %v215_v23 }
 0x1d7   :  { %v217_v28 = vmul.f32 1.442695, %v210_v27 }
 0x1d9   :  { %1356 = vpow2.f32 %v217_v28 }
 0x1da   :  { %1358 = vpow2.f32 %v160_v39 }
 0x1db   :  { %v1591_v29 = vpop.eup %1350  ;;  %1360 = vpow2.f32 %v162_v42 }
 0x1dc   :  { %223 = vxpose.xlu0.b32.start.end [1/1] (short) (narrow) %v1591_v29, 16  ;;  %1362 = vpow2.f32 %v158_v43  ;;  %v784_v63 = vsel %vm50_vm1, %v1591_v29, 0.0 }
 0x1dd   :  { %1364 = vpow2.f32 %v164_v44  ;;  %v785_v1 = vrot.slane %v784_v63, 4 }
 0x1df   :  { %v1594_v30 = vpop.eup %1352  ;;  %v786_v4 = vadd.f32 %v785_v1, %v784_v63 }
 0x1e0   :  { %v1596_v25 = vpop.eup %1354  ;;  %337 = vxpose.xlu1.b32.start.end [1/1] (short) (narrow) %v1594_v30, 16  ;;  %v791_v7 = vsel %vm50_vm1, %v1594_v30, 0.0 }
 0x1e1   :  { %450 = vxpose.xlu0.b32.start.end [1/1] (short) (narrow) %v1596_v25, 16  ;;  %v798_v3 = vsel %vm50_vm1, %v1596_v25, 0.0  ;;  %v787_v8 = vrot.slane %v786_v4, 2  ;;  %v792_v10 = vrot.slane %v791_v7, 4 }
 0x1e2   :  { %v799_v5 = vrot.slane %v798_v3, 4 }
 0x1e3   :  { %v1600_v26 = vpop.eup %1356  ;;  %v788_v15 = vadd.f32 %v787_v8, %v786_v4  ;;  %v793_v17 = vadd.f32 %v792_v10, %v791_v7 }
 0x1e4   :  { %v1359_v46 = vpop.eup %1358  ;;  %v800_v9 = vadd.f32 %v799_v5, %v798_v3  ;;  %v805_v12 = vsel %vm50_vm1, %v1600_v26, 0.0 }
 0x1e5   :  { %v695_v47 = vrot.slane %v1359_v46, %v1553_v53  ;;  %v1361_v48 = vpop.eup %1360  ;;  %v806_v20 = vrot.slane %v805_v12, 4  ;;  %v789_v23 = vrot.slane %v788_v15, 1  ;;  %v794_v27 = vrot.slane %v793_v17, 2 }
 0x1e6   :  { %563 = vxpose.xlu0.b32.start.end [1/1] (short) (narrow) %v1600_v26, 16  ;;  %v699_v49 = vrot.slane %v1361_v48, %v1553_v53  ;;  %v1363_v50 = vpop.eup %1362  ;;  %v801_v16 = vrot.slane %v800_v9, 2 }
 0x1e7   :  { %v691_v51 = vrot.slane %v1363_v50, %v1553_v53  ;;  %v1365_v52 = vpop.eup %1364  ;;  %v807_v28 = vadd.f32 %v806_v20, %v805_v12  ;;  %v790_v26 = vadd.f32 %v789_v23, %v788_v15  ;;  %v677_v20 = vld [vmem:[#allocation2 + $0x8] sm:$0xff] }
 0x1e8   :  { %v703_v54 = vrot.slane %v1365_v52, %v1553_v53  ;;  %v802_v24 = vadd.f32 %v801_v16, %v800_v9 }
 0x20b   :  { %832 = vmax.xlane.f32.xlu1 %v831_v34  ;;  %v795_v34 = vadd.f32 %v794_v27, %v793_v17 }
 0x20f   :  { %835 = vmax.xlane.f32.xlu1 %v834_v36  ;;  %v808_v36 = vrot.slane %v807_v28, 2 }
 0x213   :  { %838 = vmax.xlane.f32.xlu1 %v837_v38 }
 0x217   :  { %829 = vmax.xlane.f32.xlu0 %v828_v41 }
 0x224   :  { %709 = vperm.xlu1 %1349, %v695_v47  }
 0x228   :  { %713 = vperm.xlu1 %1349, %v699_v49   ;;  %v809_v49 = vadd.f32 %v808_v36, %v807_v28  ;;  %v680_v36 = vld [vmem:[#allocation2 + $0x20] sm:$0xff] }
 0x22c   :  { %749 = vperm.xlu1 %1349, %v1363_v50  }
 0x22d   :  { %705 = vperm.xlu0 %1348, %v691_v51  }
 0x230   :  { %765 = vperm.xlu1 %1349, %v1361_v48   ;;  %v796_v48 = vrot.slane %v795_v34, 1 }
 0x231   :  { %717 = vperm.xlu0 %1348, %v703_v54  }
 0x235   :  { %757 = vperm.xlu0 %1348, %v1359_v46  }
 0x239   :  { %773 = vperm.xlu0 %1348, %v1365_v52   ;;  %v745_v52 = vld [vmem:[#allocation3 + $0x1] sm:$0x1] }
 0x25c   :  { %v239_v55 = vpop.trf.xlu0 }
 0x25d   :  { %1280 = vmatprep.mubr.msk.f32.mxu0 %vm255_vm3, %v239_v55 }
 0x260   :  { %v240_v56 = vpop.trf.xlu0  ;;  %v353_v57 = vpop.trf.xlu1 }
 0x261   :  { %1281 = vmatmul.mubr.msk.f32.vlgmr.msra.gmra.mrb[0].mxu0 %vm255_vm3, %v240_v56  ;;  %1285 = vmatprep.mubr.msk.f32.mxu1 %vm255_vm3, %v353_v57  ;;  %v797_v56 = vadd.f32 %v796_v48, %v795_v34  ;;  %v683_v48 = vld [vmem:[#allocation2 + $0x38] sm:$0xff] }
 0x262   :  { %1289 = vmatpush3.msra.mxu0 %v221_v31 }
 0x264   :  { %v466_v58 = vpop.trf.xlu0  ;;  %v354_v59 = vpop.trf.xlu1 }
 0x265   :  { %1286 = vmatmul.mubr.msk.f32.vlgmr.msra.gmra.mrb[0].mxu1 %vm255_vm3, %v354_v59  ;;  %1290 = vmatprep.mubr.msk.f32.mxu0 %vm255_vm3, %v466_v58  ;;  %v810_v58 = vrot.slane %v809_v49, 1 }
 0x266   :  { %1294 = vmatpush3.msra.mxu1 %v1603_v32  ;;  %v803_v32 = vrot.slane %v802_v24, 1 }
 0x268   :  { %v467_v60 = vpop.trf.xlu0 }
 0x269   :  { %1291 = vmatmul.mubr.msk.f32.vlgmr.msra.gmra.mrb[2].mxu0 %vm255_vm3, %v467_v60  ;;  %v747_v60 = vld [vmem:[#allocation3 + $0x3] sm:$0x1] }
 0x26a   :  { %1302 = vmatprep.mubr.msk.f32.mxu0 %vm1462_vm4, %v1460_v45 }
 0x26c   :  { %v579_v61 = vpop.trf.xlu0 }
 0x26d   :  { %1295 = vmatprep.mubr.msk.f32.mxu1 %vm255_vm3, %v579_v61 }
 0x270   :  { %v580_v62 = vpop.trf.xlu0 }
 0x271   :  { %1296 = vmatmul.mubr.msk.f32.vlgmr.msra.gmra.mrb[2].mxu1 %vm255_vm3, %v580_v62 }
 0x272   :  { %1309 = vmatprep.mubr.msk.f32.mxu1 %vm1462_vm4, %v1460_v45 }
 0x298   :  { %v833_v0 = vpop.xlane.xlu1 %832 }
 0x299   :  { %v841_v19 = vsub.f32 %v1609_v33, %v833_v0  ;;  %v804_v33 = vadd.f32 %v803_v32, %v802_v24  ;;  %v811_v0 = vadd.f32 %v810_v58, %v809_v49  ;;  %v679_v24 = vld [vmem:[#allocation2 + $0x18] sm:$0xff]  ;;  %v681_v32 = vld [vmem:[#allocation2 + $0x28] sm:$0xff] }
 0x29b   :  { %v846_v44 = vmul.f32 1.442695, %v841_v19 }
 0x29c   :  { %v836_v2 = vpop.xlane.xlu1 %835 }
 0x29d   :  { %v842_v38 = vsub.f32 %v1616_v35, %v836_v2 }
 0x29f   :  { %v848_v50 = vmul.f32 1.442695, %v842_v38 }
 0x2a0   :  { %v839_v6 = vpop.xlane.xlu1 %838 }
 0x2a1   :  { %v843_v46 = vsub.f32 %v1623_v37, %v839_v6  ;;  %v1461_v6 = vmov 0.0|0.0  }
 0x2a2   :  { %1326 = vmatprep.subr.bf16.mxu0 %v1461_v6  ;;  %1329 = vmatprep.subr.bf16.mxu1 %v1461_v6 }
 0x2a3   :  { %v850_v55 = vmul.f32 1.442695, %v843_v46 }
 0x2a4   :  { %v1680_v11 = vpop.permute.xlu1 %709  ;;  %v830_v13 = vpop.xlane.xlu0 %829 }
 0x2a5   :  { %v840_v14 = vsub.f32 %v1630_v40, %v830_v13  ;;  %v746_v40 = vld [vmem:[#allocation3 + $0x2] sm:$0x1] }
 0x2a7   :  { %v844_v22 = vmul.f32 1.442695, %v840_v14 }
 0x2a8   :  { %v1685_v21 = vpop.permute.xlu1 %713 }
 0x2a9   :  { %1366 = vpow2.f32 %v844_v22  ;;  %v676_v22 = vld [vmem:[#allocation2] sm:$0xff] }
 0x2aa   :  { %1368 = vpow2.f32 %v846_v44 }
 0x2ab   :  { %1370 = vpow2.f32 %v848_v50  ;;  %v682_v50 = vld [vmem:[#allocation2 + $0x30] sm:$0xff] }
 0x2ac   :  { %v750_v29 = vpop.permute.xlu1 %749  ;;  %v1687_v30 = vpop.permute.xlu0 %705  ;;  %1372 = vpow2.f32 %v850_v55 }
 0x2ad   :  { %v755_v25 = vrot.slane %v750_v29, %v1553_v53  ;;  %v721_v23 = vmul.f32 %v1687_v30, %v677_v20  ;;  %v720_v27 = vmul.f32 %v1687_v30, %v676_v22  ;;  %v678_v29 = vld [vmem:[#allocation2 + $0x10] sm:$0xff]  ;;  %v725_v30 = vmul.f32 %v1685_v21, %v681_v32 }
 0x2af   :  { %v780_v31 = vmul.f32 %v755_v25, %v744_v18 }
 0x2b0   :  { %v766_v39 = vpop.permute.xlu1 %765  ;;  %v1692_v41 = vpop.permute.xlu0 %717 }
 0x2b1   :  { %v812_v42 = vadd.f32 %v790_v26, %v780_v31  ;;  %v771_v43 = vrot.slane %v766_v39, %v1553_v53  ;;  %v723_v26 = vmul.f32 %v1680_v11, %v679_v24  ;;  %v722_v31 = vmul.f32 %v1680_v11, %v678_v29 }
 0x2b3   :  { %817 = vst.msk [vmem:[#allocation3] sm:$0x1] %vm59_vm2, %v812_v42  ;;  %v782_v47 = vmul.f32 %v771_v43, %v746_v40  ;;  %v1699_v37 = vpop.eup %1366  ;;  %v724_v42 = vmul.f32 %v1685_v21, %v680_v36 }
 0x2b4   :  { %v758_v51 = vpop.permute.xlu0 %757  ;;  %v1706_v5 = vpop.eup %1368 }
 0x2b5   :  { %v814_v35 = vadd.f32 %v804_v33, %v782_v47  ;;  %v763_v54 = vrot.slane %v758_v51, %v1553_v53 }
 0x2b7   :  { %819 = vst.msk [vmem:[#allocation3 + $0x2] sm:$0x1] %vm59_vm2, %v814_v35  ;;  %v781_v57 = vmul.f32 %v763_v54, %v745_v52  ;;  %v727_v52 = vmul.f32 %v1692_v41, %v683_v48  ;;  %v726_v35 = vmul.f32 %v1692_v41, %v682_v50 }
 0x2b8   :  { %v774_v59 = vpop.permute.xlu0 %773 }
 0x2b9   :  { %v813_v61 = vadd.f32 %v797_v56, %v781_v57  ;;  %v779_v62 = vrot.slane %v774_v59, %v1553_v53  ;;  %v1710_v53 = vpop.eup %1370 }
 0x2ba   :  { %v1246_v63 = vld [vmem:[#allocation3] ss:$0 sm:$0xff]  ;;  %v1713_v10 = vpop.eup %1372 }
 0x2bb   :  { %818 = vst.msk [vmem:[#allocation3 + $0x1] sm:$0x1] %vm59_vm2, %v813_v61  ;;  %v783_v1 = vmul.f32 %v779_v62, %v747_v60  ;;  %v880_v2 = vmul.f32 %v1699_v37, %v1246_v63 }
 0x2bd   :  { %v815_v3 = vadd.f32 %v811_v0, %v783_v1  ;;  %v884_v4 = vsel %vm50_vm1, %v880_v2, 0.0 }
 0x2be   :  { %885 = vadd.xlane.f32.xlu1 %v884_v4  ;;  %v1248_v8 = vld [vmem:[#allocation3 + $0x2] ss:$0 sm:$0xff] }
 0x2bf   :  { %820 = vst.msk [vmem:[#allocation3 + $0x3] sm:$0x1] %vm59_vm2, %v815_v3  ;;  %v882_v13 = vmul.f32 %v1710_v53, %v1248_v8 }
 0x2c1   :  { %v890_v16 = vsel %vm50_vm1, %v882_v13, 0.0 }
 0x2c2   :  { %v1247_v7 = vld [vmem:[#allocation3 + $0x1] ss:$0 sm:$0xff] }
 0x2c3   :  { %v881_v9 = vmul.f32 %v1706_v5, %v1247_v7 }
 0x2c5   :  { %v887_v12 = vsel %vm50_vm1, %v881_v9, 0.0 }
 0x2c6   :  { %888 = vadd.xlane.f32.xlu0 %v887_v12  ;;  %v1249_v14 = vld [vmem:[#allocation3 + $0x3] ss:$0 sm:$0xff] }
 0x2c7   :  { %v883_v15 = vmul.f32 %v1713_v10, %v1249_v14 }
 0x2c9   :  { %v893_v17 = vsel %vm50_vm1, %v883_v15, 0.0 }
 0x2ca   :  { %891 = vadd.xlane.f32.xlu0 %v890_v16  ;;  %894 = vadd.xlane.f32.xlu1 %v893_v17 }
 0x334   :  { %v1282_v28 = vpop.f32.mrb[0].mxu0 }
 0x335   :  { %v729_v18 = vadd.f32 %v1282_v28, %v721_v23  ;;  %v328_v25 = vpop.f32.mrb[1].mxu0 }
 0x336   :  { %v728_v19 = vadd.f32 %v720_v27, %v328_v25 }
 0x337   :  { %737 = vst.msk [vmem:[#allocation2 + $0x8] sm:$0xff] %vm50_vm1, %v729_v18 }
 0x338   :  { %736 = vst.msk [vmem:[#allocation2] sm:$0xff] %vm50_vm1, %v728_v19  ;;  %v1287_v34 = vpop.f32.mrb[0].mxu1 }
 0x339   :  { %v731_v38 = vadd.f32 %v1287_v34, %v723_v26  ;;  %v441_v39 = vpop.f32.mrb[1].mxu1 }
 0x33a   :  { %v730_v40 = vadd.f32 %v722_v31, %v441_v39 }
 0x33b   :  { %739 = vst.msk [vmem:[#allocation2 + $0x18] sm:$0xff] %vm50_vm1, %v731_v38 }
 0x33c   :  { %738 = vst.msk [vmem:[#allocation2 + $0x10] sm:$0xff] %vm50_vm1, %v730_v40  ;;  %v1292_v43 = vpop.f32.mrb[2].mxu0 }
 0x33d   :  { %v733_v44 = vadd.f32 %v1292_v43, %v725_v30  ;;  %v554_v46 = vpop.f32.mrb[3].mxu0 }
 0x33e   :  { %v732_v11 = vadd.f32 %v724_v42, %v554_v46  ;;  %v913_v33 = vld [vmem:[#allocation2 + $0x8] sm:$0xff] }
 0x33f   :  { %741 = vst.msk [vmem:[#allocation2 + $0x28] sm:$0xff] %vm50_vm1, %v733_v44  ;;  %v912_v47 = vld [vmem:[#allocation2] sm:$0xff] }
 0x340   :  { %740 = vst.msk [vmem:[#allocation2 + $0x20] sm:$0xff] %vm50_vm1, %v732_v11  ;;  %v1327_v49 = vpack.c.bf16 %v913_v33, %v912_v47 }
 0x342   :  { %1328 = vmatpush3.bf16.msra.mxu0 %v1327_v49  ;;  %v915_v51 = vld [vmem:[#allocation2 + $0x18] sm:$0xff] }
 0x343   :  { %v914_v21 = vld [vmem:[#allocation2 + $0x10] sm:$0xff]  ;;  %1332 = vmatprep.subr.bf16.mxu0 %v1461_v6 }
 0x344   :  { %v1297_v54 = vpop.f32.mrb[2].mxu1  ;;  %v1330_v55 = vpack.c.bf16 %v915_v51, %v914_v21 }
 0x345   :  { %v735_v56 = vadd.f32 %v1297_v54, %v727_v52  ;;  %v667_v57 = vpop.f32.mrb[3].mxu1  ;;  %1303 = vmatmul.mubr.msk.f32.vlgmr.msra.gmra.mrb[4].mxu0 %vm50_vm1, %v1699_v37 }
 0x346   :  { %v734_v58 = vadd.f32 %v726_v35, %v667_v57  ;;  %1331 = vmatpush3.bf16.msra.mxu1 %v1330_v55  ;;  %v917_v59 = vld [vmem:[#allocation2 + $0x28] sm:$0xff]  ;;  %1316 = vmatprep.mubr.msk.f32.mxu0 %vm1462_vm4, %v1460_v45 }
 0x347   :  { %743 = vst.msk [vmem:[#allocation2 + $0x38] sm:$0xff] %vm50_vm1, %v735_v56  ;;  %v916_v60 = vld [vmem:[#allocation2 + $0x20] sm:$0xff]  ;;  %1335 = vmatprep.subr.bf16.mxu1 %v1461_v6 }
 0x348   :  { %742 = vst.msk [vmem:[#allocation2 + $0x30] sm:$0xff] %vm50_vm1, %v734_v58  ;;  %v1333_v41 = vpack.c.bf16 %v917_v59, %v916_v60 }
 0x349   :  { %1310 = vmatmul.mubr.msk.f32.vlgmr.msra.gmra.mrb[4].mxu1 %vm50_vm1, %v1706_v5 }
 0x34a   :  { %1334 = vmatpush3.bf16.msra.mxu0 %v1333_v41  ;;  %1323 = vmatprep.mubr.msk.f32.mxu1 %vm1462_vm4, %v1460_v45 }
 0x34b   :  { %v886_v63 = vpop.xlane.xlu1 %885 }
 0x34c   :  { %1374 = vrcp.f32 %v886_v63 }
 0x34d   :  { %1317 = vmatmul.mubr.msk.f32.vlgmr.msra.gmra.mrb[6].mxu0 %vm50_vm1, %v1710_v53 }
 0x34e   :  { %v919_v37 = vld [vmem:[#allocation2 + $0x38] sm:$0xff] }
 0x34f   :  { %v918_v61 = vld [vmem:[#allocation2 + $0x30] sm:$0xff] }
 0x350   :  { %v1336_v62 = vpack.c.bf16 %v919_v37, %v918_v61 }
 0x352   :  { %1337 = vmatpush3.bf16.msra.mxu1 %v1336_v62 }
 0x353   :  { %v889_v0 = vpop.xlane.xlu0 %888 }
 0x354   :  { %1376 = vrcp.f32 %v889_v0 }
 0x355   :  { %1324 = vmatmul.mubr.msk.f32.vlgmr.msra.gmra.mrb[6].mxu1 %vm50_vm1, %v1713_v10 }
 0x356   :  { %v1375_v2 = vpop.eup %1374 }
 0x357   :  { %v892_v1 = vpop.xlane.xlu0 %891  ;;  %v900_v3 = vmul.f32 %v1375_v2, %v886_v63  ;;  %v895_v4 = vpop.xlane.xlu1 %894 }
 0x358   :  { %1378 = vrcp.f32 %v892_v1 }
 0x359   :  { %1380 = vrcp.f32 %v895_v4  ;;  %v904_v5 = vsub.f32 2.0, %v900_v3 }
 0x35b   :  { %v908_v9 = vmul.f32 %v1375_v2, %v904_v5 }
 0x35e   :  { %v1377_v45 = vpop.eup %1376 }
 0x35f   :  { %v901_v6 = vmul.f32 %v1377_v45, %v889_v0 }
 0x361   :  { %v905_v7 = vsub.f32 2.0, %v901_v6 }
 0x362   :  { %v1379_v53 = vpop.eup %1378 }
 0x363   :  { %v902_v8 = vmul.f32 %v1379_v53, %v892_v1  ;;  %v909_v15 = vmul.f32 %v1377_v45, %v905_v7  ;;  %v1381_v16 = vpop.eup %1380 }
 0x364   :  { %v903_v23 = vmul.f32 %v1381_v16, %v895_v4 }
 0x365   :  { %v906_v14 = vsub.f32 2.0, %v902_v8 }
 0x366   :  { %v907_v18 = vsub.f32 2.0, %v903_v23 }
 0x367   :  { %v910_v24 = vmul.f32 %v1379_v53, %v906_v14 }
 0x368   :  { %v911_v25 = vmul.f32 %v1381_v16, %v907_v18 }
 0x418   :  { %v989_v12 = vpop.f32.mrb[4].mxu0 }
 0x419   :  { %v1212_v13 = vmul.f32 %v989_v12, %v908_v9  ;;  %v1304_v10 = vpop.f32.mrb[5].mxu0 }
 0x41b   :  { %1216 = vst.msk [vmem:[#allocation10] sm:$0xff] %vm50_vm1, %v1212_v13 }
 0x41c   :  { %v1062_v17 = vpop.f32.mrb[4].mxu1 }
 0x41d   :  { %v1213_v20 = vmul.f32 %v1062_v17, %v909_v15  ;;  %v1311_v22 = vpop.f32.mrb[5].mxu1 }
 0x41f   :  { %1217 = vst.msk [vmem:[#allocation10 + $0x8] sm:$0xff] %vm50_vm1, %v1213_v20 }
 0x420   :  { %v1135_v27 = vpop.f32.mrb[6].mxu0 }
 0x421   :  { %v1214_v28 = vmul.f32 %v1135_v27, %v910_v24  ;;  %v1318_v29 = vpop.f32.mrb[7].mxu0 }
 0x423   :  { %1218 = vst.msk [vmem:[#allocation10 + $0x10] sm:$0xff] %vm50_vm1, %v1214_v28 }
 0x428   :  { %v1208_v19 = vpop.f32.mrb[6].mxu1 }
 0x429   :  { %v1215_v26 = vmul.f32 %v1208_v19, %v911_v25  ;;  %v1325_v31 = vpop.f32.mrb[7].mxu1 }
 0x42b   :  { %1219 = vst.msk [vmem:[#allocation10 + $0x18] sm:$0xff] %vm50_vm1, %v1215_v26 }
 0x42c   :  { %1437 = shalt.err (!%p1434_p6)
}
 0x42d   :  { %s1438_s8 = scalar_lea.hbm %s1777_s4, 512 }
 0x42e   :  { %p1439_p7 = scmp.ne.s32.totalorder %s1777_s4, %s1438_s8  ;;  %p1442_p8 = scmp.lt.u32.totalorder %s1438_s8, %s1777_s4 }
 0x430   :  { %p1444_p9 = pnand %p1442_p8, %p1439_p7 }
 0x432   :  { %1447 = shalt.err (!%p1444_p9)
}
 0x433   :  { %1231 = dma.vmem_to_hbm [thread:$0]  %s1226_s30, 512, %s1777_s4, [#allocation7], %s1455_s25, %s1455_s25, %s1456_s26  }
 0x434   :  { %1452 = dma.done.wait [#allocation7], 512  }
 0x435   :  { %1453 = vsyncadd [#allocation7], 4294966784 }
 0x436   :  { %1235 = vsyncpa [#allocation6], 1 }
 0x437   :  { %1236 = vsyncpa [#allocation9], 1 }
 0x438   :  { %1237 = vsyncpa [#allocation7], 1 }

</bundles_post_ra>
